<compile_context>
chip_gen: v5e
topology: v5e:2x2
jax: 0.10.0
libtpu: 0.0.40
codegen_flags: <defaults>
</compile_context>

<pallas_src>
import jax
import jax.numpy as jnp
from jax.experimental import pallas as pl
from jax.experimental.pallas import tpu as pltpu

NUM_CLASSES = 5
RAW_FEATS = 26      # userId, movieId, 24 dense features
EMB_DIM = 10
H1, H2 = 64, 32
NUM_USERS = 6040 + 1
NUM_MOVIES = 3952 + 1

_TM_MAX = 4096      # row-tile cap: multiple of 256 (v6e MXU) and 128 (v5e MXU)


def _round_up(n, m):
    return ((n + m - 1) // m) * m


def _mlp_kernel(x_ref, ue_ref, me_ref,
                w1x_ref, w1u_ref, w1m_ref, b1_ref,
                w2_ref, b2_ref, w3_ref, b3_ref, o_ref):
    """Fused 3-layer MLP on a (TM, *) row tile.

    fc1 of the concatenated [user_emb | movie_emb | dense] features is computed as
    a sum of three matmuls; w1x has zero rows for the two raw id columns so the raw
    26-wide input row can be consumed directly (ids contribute exactly 0).
    """
    x_bf = x_ref[...].astype(jnp.bfloat16)                                   # (TM, 26)
    h1 = jnp.dot(x_bf, w1x_ref[...], preferred_element_type=jnp.float32)
    h1 = h1 + jnp.dot(ue_ref[...], w1u_ref[...], preferred_element_type=jnp.float32)
    h1 = h1 + jnp.dot(me_ref[...], w1m_ref[...], preferred_element_type=jnp.float32)
    h1 = jnp.maximum(h1 + b1_ref[...], 0.0)                                  # f32 bias/relu
    h2 = jnp.dot(h1.astype(jnp.bfloat16), w2_ref[...],
                 preferred_element_type=jnp.float32)
    h2 = jnp.maximum(h2 + b2_ref[...], 0.0)
    o_ref[...] = jnp.dot(h2.astype(jnp.bfloat16), w3_ref[...],
                         preferred_element_type=jnp.float32) + b3_ref[...]


def mlp_pallas(x2d, user_e, movie_e, w1x, w1u, w1m, b1, w2, b2, w3, b3):
    """x2d: (N, 26) f32, user_e/movie_e: (N, 10) bf16 -> (N, NUM_CLASSES) f32."""
    n = x2d.shape[0]
    tm = min(_TM_MAX, _round_up(n, 256))
    n_pad = _round_up(n, tm)
    if n_pad != n:
        pad = ((0, n_pad - n), (0, 0))
        x2d = jnp.pad(x2d, pad)
        user_e = jnp.pad(user_e, pad)
        movie_e = jnp.pad(movie_e, pad)

    row = lambda w: pl.BlockSpec((tm, w), lambda i: (i, 0))          # tiled over rows
    resident = lambda shape: pl.BlockSpec(shape, lambda i: (0, 0))   # weights stay in VMEM

    out = pl.pallas_call(
        _mlp_kernel,
        out_shape=jax.ShapeDtypeStruct((n_pad, NUM_CLASSES), jnp.float32),
        grid=(n_pad // tm,),
        in_specs=[
            row(RAW_FEATS), row(EMB_DIM), row(EMB_DIM),
            resident((RAW_FEATS, H1)), resident((EMB_DIM, H1)), resident((EMB_DIM, H1)),
            resident((1, H1)),
            resident((H1, H2)), resident((1, H2)),
            resident((H2, NUM_CLASSES)), resident((1, NUM_CLASSES)),
        ],
        out_specs=row(NUM_CLASSES),
        compiler_params=pltpu.CompilerParams(dimension_semantics=("parallel",)),
    )(x2d, user_e, movie_e, w1x, w1u, w1m, b1, w2, b2, w3, b3)
    return out[:n]


def init_params(key):
    """Xavier-normal fc weights (stored transposed to (in,out), bf16 for the MXU),
    zero f32 biases, N(0,1) f32 embedding tables — matching the PyTorch init."""
    ks = jax.random.split(key, 5)

    def xavier(k, fan_in, fan_out):
        std = jnp.sqrt(2.0 / (fan_in + fan_out))
        return jax.random.normal(k, (fan_in, fan_out), jnp.float32) * std

    # fc1: logical (44, 64); rows [0:10]=user emb, [10:20]=movie emb, [20:44]=dense.
    w1 = xavier(ks[2], 44, H1)
    w1u = w1[0:EMB_DIM].astype(jnp.bfloat16)                  # (10, 64)
    w1m = w1[EMB_DIM:2 * EMB_DIM].astype(jnp.bfloat16)        # (10, 64)
    # (26, 64): rows 0,1 (raw id columns) are zero; rows 2: carry the dense weights.
    w1x = jnp.zeros((RAW_FEATS, H1), jnp.bfloat16).at[2:].set(
        w1[2 * EMB_DIM:].astype(jnp.bfloat16))

    return {
        "user_emb": jax.random.normal(ks[0], (NUM_USERS, EMB_DIM), jnp.float32),
        "movie_emb": jax.random.normal(ks[1], (NUM_MOVIES, EMB_DIM), jnp.float32),
        "w1x": w1x, "w1u": w1u, "w1m": w1m,
        "b1": jnp.zeros((1, H1), jnp.float32),
        "w2": xavier(ks[3], H1, H2).astype(jnp.bfloat16),
        "b2": jnp.zeros((1, H2), jnp.float32),
        "w3": xavier(ks[4], H2, NUM_CLASSES).astype(jnp.bfloat16),
        "b3": jnp.zeros((1, NUM_CLASSES), jnp.float32),
    }


@jax.jit
def net_forward(x, params):
    """x: (B, S, 26) float32. Returns (B, S, NUM_CLASSES) float32 logits."""
    B, S, _ = x.shape
    n = B * S
    x2d = x.reshape(n, RAW_FEATS)
    user_idx = jnp.clip(x2d[:, 0].astype(jnp.int32), 0, NUM_USERS - 1)
    movie_idx = jnp.clip(x2d[:, 1].astype(jnp.int32), 0, NUM_MOVIES - 1)
    # TODO(synk): the embedding row-gather stays in XLA (dynamic row gather inside a
    # Pallas TPU kernel has no clean/portable lowering); the concat is fused into the
    # kernel via the split-W1 trick, and embeddings are cast to bf16 at the gather.
    user_e = jnp.take(params["user_emb"], user_idx, axis=0).astype(jnp.bfloat16)
    movie_e = jnp.take(params["movie_emb"], movie_idx, axis=0).astype(jnp.bfloat16)
    out = mlp_pallas(
        x2d, user_e, movie_e,
        params["w1x"], params["w1u"], params["w1m"], params["b1"],
        params["w2"], params["b2"],
        params["w3"], params["b3"],
    )
    return out.reshape(B, S, NUM_CLASSES)


if __name__ == "__main__":
    key = jax.random.PRNGKey(0)
    pkey, ukey, mkey, fkey = jax.random.split(key, 4)

    params = init_params(pkey)

    B, S = 2, 8  # B*S = 16 rows
    user_ids = jax.random.randint(ukey, (B, S), 0, NUM_USERS).astype(jnp.float32)
    movie_ids = jax.random.randint(mkey, (B, S), 0, NUM_MOVIES).astype(jnp.float32)
    dense = jax.random.normal(fkey, (B, S, 24), jnp.float32)
    x = jnp.concatenate([user_ids[..., None], movie_ids[..., None], dense], axis=2)  # (2, 8, 26)

    out = net_forward(x, params)
    jax.block_until_ready(out)
    assert out.shape == (B, S, NUM_CLASSES) and out.dtype == jnp.float32
    print("KERNEL_OK")
</pallas_src>

<mosaic_0001>
module attributes {stable_mosaic.version = 11 : i64} {
  func.func @_mlp_kernel(%arg0: i32, %arg1: memref<256x26xf32, #tpu.memory_space<vmem>>, %arg2: memref<256x10xbf16, #tpu.memory_space<vmem>>, %arg3: memref<256x10xbf16, #tpu.memory_space<vmem>>, %arg4: memref<26x64xbf16, #tpu.memory_space<vmem>>, %arg5: memref<10x64xbf16, #tpu.memory_space<vmem>>, %arg6: memref<10x64xbf16, #tpu.memory_space<vmem>>, %arg7: memref<1x64xf32, #tpu.memory_space<vmem>>, %arg8: memref<64x32xbf16, #tpu.memory_space<vmem>>, %arg9: memref<1x32xf32, #tpu.memory_space<vmem>>, %arg10: memref<32x5xbf16, #tpu.memory_space<vmem>>, %arg11: memref<1x5xf32, #tpu.memory_space<vmem>>, %arg12: memref<256x5xf32, #tpu.memory_space<vmem>>) attributes {dimension_semantics = [#tpu.dimension_semantics<parallel>], iteration_bounds = array<i64: 1>, scalar_prefetch = 0 : i64, scratch_operands = 0 : i64, tpu.core_type = #tpu.core_type<tc>, window_params = [{transform_indices = @transform_0, window_bounds = array<i64: 256, 26>}, {transform_indices = @transform_1, window_bounds = array<i64: 256, 10>}, {transform_indices = @transform_2, window_bounds = array<i64: 256, 10>}, {pipeline_mode = #tpu.pipeline_mode<synchronous>, transform_indices = @transform_3, window_bounds = array<i64: 26, 64>}, {pipeline_mode = #tpu.pipeline_mode<synchronous>, transform_indices = @transform_4, window_bounds = array<i64: 10, 64>}, {pipeline_mode = #tpu.pipeline_mode<synchronous>, transform_indices = @transform_5, window_bounds = array<i64: 10, 64>}, {pipeline_mode = #tpu.pipeline_mode<synchronous>, transform_indices = @transform_6, window_bounds = array<i64: 1, 64>}, {pipeline_mode = #tpu.pipeline_mode<synchronous>, transform_indices = @transform_7, window_bounds = array<i64: 64, 32>}, {pipeline_mode = #tpu.pipeline_mode<synchronous>, transform_indices = @transform_8, window_bounds = array<i64: 1, 32>}, {pipeline_mode = #tpu.pipeline_mode<synchronous>, transform_indices = @transform_9, window_bounds = array<i64: 32, 5>}, {pipeline_mode = #tpu.pipeline_mode<synchronous>, transform_indices = @transform_10, window_bounds = array<i64: 1, 5>}, {transform_indices = @transform_11, window_bounds = array<i64: 256, 5>}]} {
    %c0 = arith.constant 0 : index
    %c0_0 = arith.constant 0 : index
    %0 = vector.load %arg1[%c0, %c0_0] : memref<256x26xf32, #tpu.memory_space<vmem>>, vector<256x26xf32>
    %1 = arith.truncf %0 : vector<256x26xf32> to vector<256x26xbf16>
    %c0_1 = arith.constant 0 : index
    %c0_2 = arith.constant 0 : index
    %2 = vector.load %arg4[%c0_1, %c0_2] : memref<26x64xbf16, #tpu.memory_space<vmem>>, vector<26x64xbf16>
    %cst = arith.constant dense<0.000000e+00> : vector<256x64xf32>
    %3 = tpu.matmul %1, %2, %cst {dimension_numbers = #tpu.dot_dimension_numbers<[1], [0], [0], [1], [0, 0, 1, 1], [], []>} : vector<256x26xbf16>, vector<26x64xbf16>, vector<256x64xf32> -> vector<256x64xf32>
    %c0_3 = arith.constant 0 : index
    %c0_4 = arith.constant 0 : index
    %4 = vector.load %arg2[%c0_3, %c0_4] : memref<256x10xbf16, #tpu.memory_space<vmem>>, vector<256x10xbf16>
    %c0_5 = arith.constant 0 : index
    %c0_6 = arith.constant 0 : index
    %5 = vector.load %arg5[%c0_5, %c0_6] : memref<10x64xbf16, #tpu.memory_space<vmem>>, vector<10x64xbf16>
    %cst_7 = arith.constant dense<0.000000e+00> : vector<256x64xf32>
    %6 = tpu.matmul %4, %5, %cst_7 {dimension_numbers = #tpu.dot_dimension_numbers<[1], [0], [0], [1], [0, 0, 1, 1], [], []>} : vector<256x10xbf16>, vector<10x64xbf16>, vector<256x64xf32> -> vector<256x64xf32>
    %7 = arith.addf %3, %6 : vector<256x64xf32>
    %c0_8 = arith.constant 0 : index
    %c0_9 = arith.constant 0 : index
    %8 = vector.load %arg3[%c0_8, %c0_9] : memref<256x10xbf16, #tpu.memory_space<vmem>>, vector<256x10xbf16>
    %c0_10 = arith.constant 0 : index
    %c0_11 = arith.constant 0 : index
    %9 = vector.load %arg6[%c0_10, %c0_11] : memref<10x64xbf16, #tpu.memory_space<vmem>>, vector<10x64xbf16>
    %cst_12 = arith.constant dense<0.000000e+00> : vector<256x64xf32>
    %10 = tpu.matmul %8, %9, %cst_12 {dimension_numbers = #tpu.dot_dimension_numbers<[1], [0], [0], [1], [0, 0, 1, 1], [], []>} : vector<256x10xbf16>, vector<10x64xbf16>, vector<256x64xf32> -> vector<256x64xf32>
    %11 = arith.addf %7, %10 : vector<256x64xf32>
    %c0_13 = arith.constant 0 : index
    %c0_14 = arith.constant 0 : index
    %12 = vector.load %arg7[%c0_13, %c0_14] : memref<1x64xf32, #tpu.memory_space<vmem>>, vector<1x64xf32>
    %13 = vector.broadcast %12 : vector<1x64xf32> to vector<256x64xf32>
    %14 = arith.addf %11, %13 : vector<256x64xf32>
    %cst_15 = arith.constant 0.000000e+00 : f32
    %15 = vector.broadcast %cst_15 : f32 to vector<256x64xf32>
    %16 = arith.maximumf %14, %15 : vector<256x64xf32>
    %17 = arith.truncf %16 : vector<256x64xf32> to vector<256x64xbf16>
    %c0_16 = arith.constant 0 : index
    %c0_17 = arith.constant 0 : index
    %18 = vector.load %arg8[%c0_16, %c0_17] : memref<64x32xbf16, #tpu.memory_space<vmem>>, vector<64x32xbf16>
    %cst_18 = arith.constant dense<0.000000e+00> : vector<256x32xf32>
    %19 = tpu.matmul %17, %18, %cst_18 {dimension_numbers = #tpu.dot_dimension_numbers<[1], [0], [0], [1], [0, 0, 1, 1], [], []>} : vector<256x64xbf16>, vector<64x32xbf16>, vector<256x32xf32> -> vector<256x32xf32>
    %c0_19 = arith.constant 0 : index
    %c0_20 = arith.constant 0 : index
    %20 = vector.load %arg9[%c0_19, %c0_20] : memref<1x32xf32, #tpu.memory_space<vmem>>, vector<1x32xf32>
    %21 = vector.broadcast %20 : vector<1x32xf32> to vector<256x32xf32>
    %22 = arith.addf %19, %21 : vector<256x32xf32>
    %cst_21 = arith.constant 0.000000e+00 : f32
    %23 = vector.broadcast %cst_21 : f32 to vector<256x32xf32>
    %24 = arith.maximumf %22, %23 : vector<256x32xf32>
    %25 = arith.truncf %24 : vector<256x32xf32> to vector<256x32xbf16>
    %c0_22 = arith.constant 0 : index
    %c0_23 = arith.constant 0 : index
    %26 = vector.load %arg10[%c0_22, %c0_23] : memref<32x5xbf16, #tpu.memory_space<vmem>>, vector<32x5xbf16>
    %cst_24 = arith.constant dense<0.000000e+00> : vector<256x5xf32>
    %27 = tpu.matmul %25, %26, %cst_24 {dimension_numbers = #tpu.dot_dimension_numbers<[1], [0], [0], [1], [0, 0, 1, 1], [], []>} : vector<256x32xbf16>, vector<32x5xbf16>, vector<256x5xf32> -> vector<256x5xf32>
    %c0_25 = arith.constant 0 : index
    %c0_26 = arith.constant 0 : index
    %28 = vector.load %arg11[%c0_25, %c0_26] : memref<1x5xf32, #tpu.memory_space<vmem>>, vector<1x5xf32>
    %29 = vector.broadcast %28 : vector<1x5xf32> to vector<256x5xf32>
    %30 = arith.addf %27, %29 : vector<256x5xf32>
    %c0_27 = arith.constant 0 : index
    %c0_28 = arith.constant 0 : index
    %31 = vector.load %arg12[%c0_27, %c0_28] : memref<256x5xf32, #tpu.memory_space<vmem>>, vector<256x5xf32>
    tpu.vector_store %arg12[%c0_27, %c0_28], %30 {strides = array<i32>} : memref<256x5xf32, #tpu.memory_space<vmem>>, vector<256x5xf32>,
    return
  }
  func.func @transform_0(%arg0: i32) -> (i32, i32) {
    %c0_i32 = arith.constant 0 : i32
    %c0_i32_0 = arith.constant 0 : i32
    return %arg0, %c0_i32 : i32, i32
  }
  func.func @transform_1(%arg0: i32) -> (i32, i32) {
    %c0_i32 = arith.constant 0 : i32
    %c0_i32_0 = arith.constant 0 : i32
    return %arg0, %c0_i32 : i32, i32
  }
  func.func @transform_2(%arg0: i32) -> (i32, i32) {
    %c0_i32 = arith.constant 0 : i32
    %c0_i32_0 = arith.constant 0 : i32
    return %arg0, %c0_i32 : i32, i32
  }
  func.func @transform_3(%arg0: i32) -> (i32, i32) {
    %c0_i32 = arith.constant 0 : i32
    %c0_i32_0 = arith.constant 0 : i32
    %c0_i32_1 = arith.constant 0 : i32
    return %c0_i32, %c0_i32_0 : i32, i32
  }
  func.func @transform_4(%arg0: i32) -> (i32, i32) {
    %c0_i32 = arith.constant 0 : i32
    %c0_i32_0 = arith.constant 0 : i32
    %c0_i32_1 = arith.constant 0 : i32
    return %c0_i32, %c0_i32_0 : i32, i32
  }
  func.func @transform_5(%arg0: i32) -> (i32, i32) {
    %c0_i32 = arith.constant 0 : i32
    %c0_i32_0 = arith.constant 0 : i32
    %c0_i32_1 = arith.constant 0 : i32
    return %c0_i32, %c0_i32_0 : i32, i32
  }
  func.func @transform_6(%arg0: i32) -> (i32, i32) {
    %c0_i32 = arith.constant 0 : i32
    %c0_i32_0 = arith.constant 0 : i32
    %c0_i32_1 = arith.constant 0 : i32
    return %c0_i32, %c0_i32_0 : i32, i32
  }
  func.func @transform_7(%arg0: i32) -> (i32, i32) {
    %c0_i32 = arith.constant 0 : i32
    %c0_i32_0 = arith.constant 0 : i32
    %c0_i32_1 = arith.constant 0 : i32
    return %c0_i32, %c0_i32_0 : i32, i32
  }
  func.func @transform_8(%arg0: i32) -> (i32, i32) {
    %c0_i32 = arith.constant 0 : i32
    %c0_i32_0 = arith.constant 0 : i32
    %c0_i32_1 = arith.constant 0 : i32
    return %c0_i32, %c0_i32_0 : i32, i32
  }
  func.func @transform_9(%arg0: i32) -> (i32, i32) {
    %c0_i32 = arith.constant 0 : i32
    %c0_i32_0 = arith.constant 0 : i32
    %c0_i32_1 = arith.constant 0 : i32
    return %c0_i32, %c0_i32_0 : i32, i32
  }
  func.func @transform_10(%arg0: i32) -> (i32, i32) {
    %c0_i32 = arith.constant 0 : i32
    %c0_i32_0 = arith.constant 0 : i32
    %c0_i32_1 = arith.constant 0 : i32
    return %c0_i32, %c0_i32_0 : i32, i32
  }
  func.func @transform_11(%arg0: i32) -> (i32, i32) {
    %c0_i32 = arith.constant 0 : i32
    %c0_i32_0 = arith.constant 0 : i32
    return %arg0, %c0_i32 : i32, i32
  }
}

</mosaic_0001>

<bundles_post_ra>
// kernel: net_forward.1
= control target key start
LH: loop header
LB: loop body
LE: loop exit
PB: predicated region body
PF: predicated region fallthrough
CT: control target
= control target key end

     0   :  { %vm259_vm0 = vcmask 1044480   ;;  %vm210_vm1 = vcmask 80896   ;;  %vm363_vm2 = vcmask 211968   ;;  %vm915_vm3 = vcmask 523264   ;;  %s2277_s4 = inlined_call_operand.vmem [shape: bf16[10,64], index: 4, kind: input, shape index: {}]   ;;  %s2278_s5 = inlined_call_operand.vmem [shape: bf16[10,64], index: 5, kind: input, shape index: {}]   ;;  %s2279_s3 = inlined_call_operand.vmem [shape: bf16[26,64], index: 3, kind: input, shape index: {}]   ;;  %s2280_s1 = inlined_call_operand.vmem [shape: bf16[256,10], index: 1, kind: input, shape index: {}]   ;;  %s2281_s0 = inlined_call_operand.vmem [shape: f32[256,26], index: 0, kind: input, shape index: {}]   ;;  %s2282_s2 = inlined_call_operand.vmem [shape: bf16[256,10], index: 2, kind: input, shape index: {}]   ;;  %s2283_s6 = inlined_call_operand.vmem [shape: f32[1,64], index: 6, kind: input, shape index: {}]   ;;  %s2284_s7 = inlined_call_operand.vmem [shape: bf16[64,32], index: 7, kind: input, shape index: {}]   ;;  %s2285_s8 = inlined_call_operand.vmem [shape: f32[1,32], index: 8, kind: input, shape index: {}]   ;;  %s2286_s9 = inlined_call_operand.vmem [shape: bf16[32,5], index: 9, kind: input, shape index: {}]   ;;  %s2287_s10 = inlined_call_operand.vmem [shape: f32[1,5], index: 10, kind: input, shape index: {}]   ;;  %s2288_s11 = inlined_call_operand.vmem [shape: f32[256,5], index: 11, kind: output, shape index: {}]  }
   0x1   :  { %v1362_v0 = vld [vmem:[%s2277_s4] sm:$0xf]  ;;  %v1562_v1 = vld [vmem:[%s2277_s4] sm:$0x10]  ;;  %v1386_v6 = vld [vmem:[%s2279_s3 + $0x8] sm:$0xf] }
   0x2   :  { %v1363_v2 = vor.u32 %v1562_v1, %v1362_v0  ;;  %v1470_v3 = vld [vmem:[%s2278_s5] sm:$0xf]  ;;  %v1579_v4 = vld [vmem:[%s2278_s5] sm:$0x10]  ;;  %v1545_v7 = vld [vmem:[%s2279_s3 + $0x8] sm:$0x10] }
   0x3   :  { %v1471_v5 = vor.u32 %v1579_v4, %v1470_v3  ;;  %v1550_v9 = vld [vmem:[%s2280_s1 + $0x20] sm:$0xff]  ;;  %v1387_v11 = vor.u32 %v1545_v7, %v1386_v6  ;;  %v1551_v15 = vld [vmem:[%s2280_s1 + $0x28] sm:$0xff]  ;;  %v1552_v18 = vld [vmem:[%s2280_s1 + $0x30] sm:$0xff]  ;;  %vm1121_vm4 = vcmask 261120   ;;  %vm1259_vm5 = vcmask 39936  }
   0x4   :  { %v261_v8 = vsel %vm259_vm0, %v1363_v2, 0  ;;  %v1554_v10 = vld [vmem:[%s2280_s1 + $0x40] sm:$0xff]  ;;  %v1555_v16 = vld [vmem:[%s2280_s1 + $0x48] sm:$0xff]  ;;  %v1556_v19 = vld [vmem:[%s2280_s1 + $0x50] sm:$0xff] }
   0x5   :  { %1586 = vmatpush.bf16.msra.mxu1 %v261_v8  ;;  %1587 = vmatpush.bf16.msra.mxu2 %v261_v8  ;;  %v672_v12 = vsel %vm259_vm0, %v1471_v5, 0  ;;  %v413_v13 = vsel %vm259_vm0, %v1387_v11, 0  ;;  %v1544_v14 = vld [vmem:[%s2279_s3] sm:$0xff]  ;;  %v1547_v20 = vld [vmem:[%s2280_s1 + $0x8] sm:$0xff]  ;;  %v1553_v21 = vld [vmem:[%s2280_s1 + $0x38] sm:$0xff] }
   0x6   :  { %270 = vmatpush.bf16.msra.mxu0 %v261_v8  ;;  %1588 = vmatpush.bf16.msra.mxu3 %v261_v8  ;;  %v1546_v17 = vld [vmem:[%s2280_s1] sm:$0xff]  ;;  %v1557_v22 = vld [vmem:[%s2280_s1 + $0x58] sm:$0xff]  ;;  %v1548_v23 = vld [vmem:[%s2280_s1 + $0x10] sm:$0xff] }
   0x7   :  { %v39_v24 = vld [vmem:[%s2281_s0] sm:$0xff]  ;;  %v40_v25 = vld [vmem:[%s2281_s0 + $0x8] sm:$0xff]  ;;  %v1549_v28 = vld [vmem:[%s2280_s1 + $0x18] sm:$0xff] }
   0x8   :  { %1368 = vmatmul.msk.bf16.vlgmr.msra.gmra.mxu1 %vm210_vm1, %v1550_v9  ;;  %1372 = vmatmul.msk.bf16.vlgmr.msra.gmra.mxu2 %vm210_vm1, %v1554_v10  ;;  %v71_v26 = vpack.c.bf16 %v40_v25, %v39_v24  ;;  %v1563_v27 = vld [vmem:[%s2282_s2] sm:$0xff]  ;;  %v41_v29 = vld [vmem:[%s2281_s0 + $0x10] sm:$0xff]  ;;  %v42_v30 = vld [vmem:[%s2281_s0 + $0x18] sm:$0xff] }
   0x9   :  { %681 = vmatpush.bf16.msrb.mxu2 %v672_v12  ;;  %421 = vmatpush.bf16.msrb.mxu1 %v413_v13  ;;  %v72_v31 = vpack.c.bf16 %v42_v30, %v41_v29  ;;  %v1564_v32 = vld [vmem:[%s2282_s2 + $0x8] sm:$0xff]  ;;  %v43_v33 = vld [vmem:[%s2281_s0 + $0x20] sm:$0xff]  ;;  %v1565_v36 = vld [vmem:[%s2282_s2 + $0x10] sm:$0xff] }
   0xa   :  { %1364 = vmatmul.msk.bf16.vlgmr.msra.gmra.mxu0 %vm210_vm1, %v1546_v17  ;;  %v44_v34 = vld [vmem:[%s2281_s0 + $0x28] sm:$0xff]  ;;  %v45_v37 = vld [vmem:[%s2281_s0 + $0x30] sm:$0xff]  ;;  %v46_v38 = vld [vmem:[%s2281_s0 + $0x38] sm:$0xff] }
   0xb   :  { %v73_v35 = vpack.c.bf16 %v44_v34, %v43_v33  ;;  %v1558_v39 = vld [vmem:[%s2280_s1 + $0x60] sm:$0xff]  ;;  %v74_v40 = vpack.c.bf16 %v46_v38, %v45_v37  ;;  %v1566_v41 = vld [vmem:[%s2282_s2 + $0x18] sm:$0xff]  ;;  %v48_v44 = vld [vmem:[%s2281_s0 + $0x48] sm:$0xff] }
   0xc   :  { %1376 = vmatmul.msk.bf16.vlgmr.msra.gmra.mxu3 %vm210_vm1, %v1558_v39  ;;  %v1583_v42 = vld [vmem:[%s2284_s7 + $0x18] sm:$0xff]  ;;  %v47_v43 = vld [vmem:[%s2281_s0 + $0x40] sm:$0xff]  ;;  %v1559_v45 = vld [vmem:[%s2280_s1 + $0x68] sm:$0xff] }
   0xd   :  { %422 = vmatpush.bf16.msrb.mxu1 %v1544_v14  ;;  %968 = vmatpush.bf16.msrb.mxu3 %v1583_v42  ;;  %v75_v46 = vpack.c.bf16 %v48_v44, %v47_v43  ;;  %v1567_v47 = vld [vmem:[%s2282_s2 + $0x20] sm:$0xff]  ;;  %v1582_v50 = vld [vmem:[%s2284_s7 + $0x10] sm:$0xff]  ;;  %v50_v53 = vld [vmem:[%s2281_s0 + $0x58] sm:$0xff] }
   0xe   :  { %v49_v52 = vld [vmem:[%s2281_s0 + $0x50] sm:$0xff]  ;;  %v1568_v57 = vld [vmem:[%s2282_s2 + $0x28] sm:$0xff]  ;;  %v51_v62 = vld [vmem:[%s2281_s0 + $0x60] sm:$0xff] }
   0xf   :  { %v1560_v54 = vld [vmem:[%s2280_s1 + $0x70] sm:$0xff]  ;;  %v76_v56 = vpack.c.bf16 %v50_v53, %v49_v52  ;;  %v1581_v60 = vld [vmem:[%s2284_s7 + $0x8] sm:$0xff]  ;;  %v1561_v0 = vld [vmem:[%s2280_s1 + $0x78] sm:$0xff] }
  0x10   :  { %v52_v63 = vld [vmem:[%s2281_s0 + $0x68] sm:$0xff]  ;;  %v1569_v3 = vld [vmem:[%s2282_s2 + $0x30] sm:$0xff]  ;;  %v1580_v7 = vld [vmem:[%s2284_s7] sm:$0xff] }
  0x11   :  { %969 = vmatpush.bf16.msrb.mxu3 %v1582_v50  ;;  %v77_v2 = vpack.c.bf16 %v52_v63, %v51_v62  ;;  %v53_v8 = vld [vmem:[%s2281_s0 + $0x70] sm:$0xff]  ;;  %v54_v9 = vld [vmem:[%s2281_s0 + $0x78] sm:$0xff]  ;;  %v55_v17 = vld [vmem:[%s2281_s0 + $0x80] sm:$0xff] }
  0x12   :  { %v78_v11 = vpack.c.bf16 %v54_v9, %v53_v8  ;;  %v1570_v12 = vld [vmem:[%s2282_s2 + $0x38] sm:$0xff]  ;;  %v1886_v29 = vld [vmem:[%s2283_s6] ss:$0 sm:$0xff]  ;;  %v57_v30 = vld [vmem:[%s2281_s0 + $0x90] sm:$0xff] }
  0x13   :  { %v1572_v37 = vld [vmem:[%s2282_s2 + $0x48] sm:$0xff]  ;;  %v59_v50 = vld [vmem:[%s2281_s0 + $0xa0] sm:$0xff]  ;;  %v1573_v63 = vld [vmem:[%s2282_s2 + $0x50] sm:$0xff] }
  0x14   :  { %v60_v52 = vld [vmem:[%s2281_s0 + $0xa8] sm:$0xff] }
  0x15   :  { %970 = vmatpush.bf16.msrb.mxu3 %v1581_v60  ;;  %v81_v62 = vpack.c.bf16 %v60_v52, %v59_v50 }
  0x18   :  { %1369 = vmatmul.msk.bf16.gmra.mxu1 %vm210_vm1, %v1551_v15  ;;  %1373 = vmatmul.msk.bf16.gmra.mxu2 %vm210_vm1, %v1555_v16 }
  0x19   :  { %971 = vmatpush.bf16.msrb.mxu3 %v1580_v7 }
  0x1a   :  { %1365 = vmatmul.msk.bf16.gmra.mxu0 %vm210_vm1, %v1547_v20 }
  0x1c   :  { %1377 = vmatmul.msk.bf16.gmra.mxu3 %vm210_vm1, %v1559_v45 }
  0x28   :  { %1370 = vmatmul.msk.bf16.gmra.mxu1 %vm210_vm1, %v1552_v18  ;;  %1374 = vmatmul.msk.bf16.gmra.mxu2 %vm210_vm1, %v1556_v19  ;;  %v56_v18 = vld [vmem:[%s2281_s0 + $0x88] sm:$0xff] }
  0x29   :  { %v79_v20 = vpack.c.bf16 %v56_v18, %v55_v17  ;;  %v61_v18 = vld [vmem:[%s2281_s0 + $0xb0] sm:$0xff] }
  0x2a   :  { %1366 = vmatmul.msk.bf16.gmra.mxu0 %vm210_vm1, %v1548_v23 }
  0x2c   :  { %1378 = vmatmul.msk.bf16.gmra.mxu3 %vm210_vm1, %v1560_v54 }
  0x38   :  { %1371 = vmatmul.msk.bf16.gmra.mxu1 %vm210_vm1, %v1553_v21  ;;  %1375 = vmatmul.msk.bf16.gmra.mxu2 %vm210_vm1, %v1557_v22  ;;  %v1571_v21 = vld [vmem:[%s2282_s2 + $0x40] sm:$0xff] }
  0x3a   :  { %1367 = vmatmul.msk.bf16.gmra.mxu0 %vm210_vm1, %v1549_v28 }
  0x3c   :  { %1379 = vmatmul.msk.bf16.gmra.mxu3 %vm210_vm1, %v1561_v0 }
  0x48   :  { %1388 = vmatmul.msk.bf16.vlgmr.msrb.gmra.mxu1 %vm363_vm2, %v71_v26  ;;  %1472 = vmatmul.msk.bf16.vlgmr.msrb.gmra.mxu2 %vm210_vm1, %v1563_v27 }
  0x58   :  { %1389 = vmatmul.msk.bf16.gmra.mxu1 %vm363_vm2, %v72_v31  ;;  %1473 = vmatmul.msk.bf16.gmra.mxu2 %vm210_vm1, %v1564_v32  ;;  %v58_v31 = vld [vmem:[%s2281_s0 + $0x98] sm:$0xff] }
  0x68   :  { %1390 = vmatmul.msk.bf16.gmra.mxu1 %vm363_vm2, %v73_v35  ;;  %1474 = vmatmul.msk.bf16.gmra.mxu2 %vm210_vm1, %v1565_v36  ;;  %v80_v36 = vpack.c.bf16 %v58_v31, %v57_v30 }
  0x78   :  { %1391 = vmatmul.msk.bf16.gmra.mxu1 %vm363_vm2, %v74_v40  ;;  %1475 = vmatmul.msk.bf16.gmra.mxu2 %vm210_vm1, %v1566_v41 }
  0x85   :  { %v1788_v48 = vpop.f32.mrf.mxu1 }
  0x87   :  { %v272_v15 = vpop.f32.mrf.mxu0 }
  0x88   :  { %1392 = vmatmul.msk.bf16.gmra.mxu1 %vm363_vm2, %v75_v46  ;;  %1476 = vmatmul.msk.bf16.gmra.mxu2 %vm210_vm1, %v1567_v47 }
  0x8b   :  { %v1792_v49 = vpop.f32.mrf.mxu2 }
  0x8d   :  { %v1797_v51 = vpop.f32.mrf.mxu1 }
  0x8f   :  { %v274_v23 = vpop.f32.mrf.mxu0 }
  0x93   :  { %v1808_v55 = vpop.f32.mrf.mxu2 }
  0x95   :  { %v1814_v58 = vpop.f32.mrf.mxu1 }
  0x97   :  { %v277_v27 = vpop.f32.mrf.mxu0 }
  0x98   :  { %1393 = vmatmul.msk.bf16.gmra.mxu1 %vm363_vm2, %v76_v56  ;;  %1477 = vmatmul.msk.bf16.gmra.mxu2 %vm210_vm1, %v1568_v57 }
  0x9b   :  { %v1818_v59 = vpop.f32.mrf.mxu2 }
  0x9d   :  { %v1823_v61 = vpop.f32.mrf.mxu1 }
  0x9f   :  { %v279_v42 = vpop.f32.mrf.mxu0 }
  0xa3   :  { %v1834_v1 = vpop.f32.mrf.mxu2 }
  0xa5   :  { %v1840_v4 = vpop.f32.mrf.mxu1 }
  0xa7   :  { %v282_v54 = vpop.f32.mrf.mxu0 }
  0xa8   :  { %1394 = vmatmul.msk.bf16.gmra.mxu1 %vm363_vm2, %v77_v2  ;;  %1478 = vmatmul.msk.bf16.gmra.mxu2 %vm210_vm1, %v1569_v3 }
  0xab   :  { %v1844_v5 = vpop.f32.mrf.mxu2 }
  0xad   :  { %v1846_v6 = vpop.f32.mrf.mxu1 }
  0xb3   :  { %v1857_v10 = vpop.f32.mrf.mxu2 }
  0xb5   :  { %v1862_v13 = vpop.f32.mrf.mxu1 }
  0xb8   :  { %1395 = vmatmul.msk.bf16.gmra.mxu1 %vm363_vm2, %v78_v11  ;;  %1479 = vmatmul.msk.bf16.gmra.mxu2 %vm210_vm1, %v1570_v12  ;;  %v284_v12 = vpop.f32.mrf.mxu0 }
  0xbb   :  { %v1866_v14 = vpop.f32.mrf.mxu2 }
  0xbd   :  { %v1868_v16 = vpop.f32.mrf.mxu1 }
  0xc0   :  { %v287_v30 = vpop.f32.mrf.mxu0 }
  0xc3   :  { %v1876_v19 = vpop.f32.mrf.mxu2 }
  0xc5   :  { %v424_v22 = vpop.f32.mrf.mxu1 }
  0xc6   :  { %v425_v25 = vadd.f32 %v424_v22, %v272_v15 }
  0xc8   :  { %1396 = vmatmul.msk.bf16.gmra.mxu1 %vm363_vm2, %v79_v20  ;;  %1480 = vmatmul.msk.bf16.gmra.mxu2 %vm210_vm1, %v1571_v21  ;;  %v62_v20 = vld [vmem:[%s2281_s0 + $0xb8] sm:$0xff] }
  0xcb   :  { %v683_v24 = vpop.f32.mrf.mxu2 }
  0xcc   :  { %v763_v28 = vadd.f32 %v683_v24, %v425_v25  ;;  %v82_v25 = vpack.c.bf16 %v62_v20, %v61_v18 }
  0xcd   :  { %v426_v26 = vpop.f32.mrf.mxu1 }
  0xce   :  { %v427_v32 = vadd.f32 %v426_v26, %v274_v23  ;;  %v799_v34 = vadd.f32 %v1886_v29, %v763_v28  ;;  %v1574_v26 = vld [vmem:[%s2282_s2 + $0x58] sm:$0xff] }
  0xd0   :  { %v831_v40 = vmax.f32 %v799_v34, 0.0 }
  0xd3   :  { %v685_v33 = vpop.f32.mrf.mxu2 }
  0xd4   :  { %v764_v35 = vadd.f32 %v685_v33, %v427_v32 }
  0xd5   :  { %v429_v38 = vpop.f32.mrf.mxu1 }
  0xd6   :  { %v800_v39 = vadd.f32 %v1886_v29, %v764_v35  ;;  %v430_v45 = vadd.f32 %v429_v38, %v277_v27  ;;  %v289_v38 = vpop.f32.mrf.mxu0 }
  0xd8   :  { %v832_v41 = vmax.f32 %v800_v39, 0.0  ;;  %1397 = vmatmul.msk.bf16.gmra.mxu1 %vm363_vm2, %v80_v36  ;;  %1481 = vmatmul.msk.bf16.gmra.mxu2 %vm210_vm1, %v1572_v37  ;;  %v63_v39 = vld [vmem:[%s2281_s0 + $0xc0] sm:$0xff] }
  0xda   :  { %v863_v43 = vpack.c.bf16 %v832_v41, %v831_v40  ;;  %v64_v40 = vld [vmem:[%s2281_s0 + $0xc8] sm:$0xff] }
  0xdb   :  { %v688_v44 = vpop.f32.mrf.mxu2 }
  0xdc   :  { %1504 = vmatmul.msk.bf16.vlgmr.msrb.gmra.mxu3 %vm915_vm3, %v863_v43  ;;  %v765_v47 = vadd.f32 %v688_v44, %v430_v45  ;;  %v83_v45 = vpack.c.bf16 %v64_v40, %v63_v39 }
  0xdd   :  { %v431_v46 = vpop.f32.mrf.mxu1 }
  0xde   :  { %v432_v53 = vadd.f32 %v431_v46, %v279_v42  ;;  %v801_v57 = vadd.f32 %v1886_v29, %v765_v47  ;;  %v1575_v46 = vld [vmem:[%s2282_s2 + $0x60] sm:$0xff] }
  0xe0   :  { %v833_v3 = vmax.f32 %v801_v57, 0.0 }
  0xe3   :  { %v690_v56 = vpop.f32.mrf.mxu2 }
  0xe4   :  { %v766_v60 = vadd.f32 %v690_v56, %v432_v53 }
  0xe5   :  { %v434_v0 = vpop.f32.mrf.mxu1 }
  0xe6   :  { %v802_v2 = vadd.f32 %v1886_v29, %v766_v60  ;;  %v435_v11 = vadd.f32 %v434_v0, %v282_v54  ;;  %v1948_v0 = vpop.f32.mrf.mxu3 }
  0xe8   :  { %v834_v7 = vmax.f32 %v802_v2, 0.0  ;;  %1398 = vmatmul.msk.bf16.gmra.mxu1 %vm363_vm2, %v81_v62  ;;  %1482 = vmatmul.msk.bf16.gmra.mxu2 %vm210_vm1, %v1573_v63  ;;  %v1585_v63 = vld [vmem:[%s2286_s9 + $0x8] sm:$0xff]  ;;  %v65_v2 = vld [vmem:[%s2281_s0 + $0xd0] sm:$0xff] }
  0xe9   :  { %1176 = vmatpush.bf16.msrb.mxu0 %v1585_v63 }
  0xea   :  { %v864_v8 = vpack.c.bf16 %v834_v7, %v833_v3  ;;  %v66_v3 = vld [vmem:[%s2281_s0 + $0xd8] sm:$0xff] }
  0xeb   :  { %v693_v9 = vpop.f32.mrf.mxu2 }
  0xec   :  { %1505 = vmatmul.msk.bf16.gmra.mxu3 %vm915_vm3, %v864_v8  ;;  %v767_v17 = vadd.f32 %v693_v9, %v435_v11  ;;  %v84_v11 = vpack.c.bf16 %v66_v3, %v65_v2 }
  0xed   :  { %v436_v15 = vpop.f32.mrf.mxu1 }
  0xee   :  { %v437_v21 = vadd.f32 %v436_v15, %v284_v12  ;;  %v803_v23 = vadd.f32 %v1886_v29, %v767_v17  ;;  %v1576_v12 = vld [vmem:[%s2282_s2 + $0x68] sm:$0xff] }
  0xf0   :  { %v835_v31 = vmax.f32 %v803_v23, 0.0 }
  0xf3   :  { %v695_v22 = vpop.f32.mrf.mxu2 }
  0xf4   :  { %v768_v24 = vadd.f32 %v695_v22, %v437_v21  ;;  %v1964_v22 = vpop.f32.mrf.mxu3 }
  0xf5   :  { %v439_v27 = vpop.f32.mrf.mxu1 }
  0xf6   :  { %v804_v28 = vadd.f32 %v1886_v29, %v768_v24  ;;  %v440_v35 = vadd.f32 %v439_v27, %v287_v30  ;;  %v68_v27 = vld [vmem:[%s2281_s0 + $0xe8] sm:$0xff] }
  0xf8   :  { %v836_v32 = vmax.f32 %v804_v28, 0.0  ;;  %1399 = vmatmul.msk.bf16.gmra.mxu1 %vm363_vm2, %v82_v25  ;;  %1483 = vmatmul.msk.bf16.gmra.mxu2 %vm210_vm1, %v1574_v26  ;;  %v67_v26 = vld [vmem:[%s2281_s0 + $0xe0] sm:$0xff] }
  0xfa   :  { %v865_v33 = vpack.c.bf16 %v836_v32, %v835_v31 }
  0xfb   :  { %v698_v34 = vpop.f32.mrf.mxu2 }
  0xfc   :  { %1506 = vmatmul.msk.bf16.gmra.mxu3 %vm915_vm3, %v865_v33  ;;  %v769_v37 = vadd.f32 %v698_v34, %v440_v35  ;;  %v85_v33 = vpack.c.bf16 %v68_v27, %v67_v26  ;;  %v1979_v35 = vpop.f32.mrf.mxu3 }
  0xfd   :  { %v441_v36 = vpop.f32.mrf.mxu1 }
  0xfe   :  { %v442_v41 = vadd.f32 %v441_v36, %v289_v38  ;;  %v805_v43 = vadd.f32 %v1886_v29, %v769_v37 }
 0x100   :  { %v837_v52 = vmax.f32 %v805_v43, 0.0 }
 0x103   :  { %v700_v42 = vpop.f32.mrf.mxu2 }
 0x104   :  { %v770_v44 = vadd.f32 %v700_v42, %v442_v41  ;;  %v1986_v42 = vpop.f32.mrf.mxu3 }
 0x105   :  { %v444_v47 = vpop.f32.mrf.mxu1 }
 0x106   :  { %v806_v50 = vadd.f32 %v1886_v29, %v770_v44  ;;  %v445_v60 = vadd.f32 %v444_v47, %v1788_v48  ;;  %v1584_v44 = vld [vmem:[%s2286_s9] sm:$0xff] }
 0x107   :  { %1177 = vmatpush.bf16.msrb.mxu0 %v1584_v44 }
 0x108   :  { %v838_v53 = vmax.f32 %v806_v50, 0.0  ;;  %1400 = vmatmul.msk.bf16.gmra.mxu1 %vm363_vm2, %v83_v45  ;;  %1484 = vmatmul.msk.bf16.gmra.mxu2 %vm210_vm1, %v1575_v46  ;;  %v69_v45 = vld [vmem:[%s2281_s0 + $0xf0] sm:$0xff]  ;;  %v70_v46 = vld [vmem:[%s2281_s0 + $0xf8] sm:$0xff] }
 0x10a   :  { %v866_v54 = vpack.c.bf16 %v838_v53, %v837_v52  ;;  %v86_v53 = vpack.c.bf16 %v70_v46, %v69_v45 }
 0x10b   :  { %v703_v56 = vpop.f32.mrf.mxu2 }
 0x10c   :  { %1507 = vmatmul.msk.bf16.gmra.mxu3 %vm915_vm3, %v866_v54  ;;  %v771_v62 = vadd.f32 %v703_v56, %v445_v60  ;;  %v1578_v54 = vld [vmem:[%s2282_s2 + $0x78] sm:$0xff] }
 0x10d   :  { %v446_v57 = vpop.f32.mrf.mxu1 }
 0x10e   :  { %v447_v7 = vadd.f32 %v446_v57, %v1797_v51  ;;  %v807_v48 = vadd.f32 %v1886_v29, %v771_v62 }
 0x110   :  { %v839_v18 = vmax.f32 %v807_v48, 0.0 }
 0x113   :  { %v705_v8 = vpop.f32.mrf.mxu2 }
 0x114   :  { %v772_v9 = vadd.f32 %v705_v8, %v447_v7 }
 0x115   :  { %v449_v15 = vpop.f32.mrf.mxu1 }
 0x116   :  { %v808_v17 = vadd.f32 %v1886_v29, %v772_v9  ;;  %v450_v24 = vadd.f32 %v449_v15, %v1814_v58  ;;  %v1577_v58 = vld [vmem:[%s2282_s2 + $0x70] sm:$0xff] }
 0x118   :  { %v840_v20 = vmax.f32 %v808_v17, 0.0  ;;  %1401 = vmatmul.msk.bf16.gmra.mxu1 %vm363_vm2, %v84_v11  ;;  %1485 = vmatmul.msk.bf16.gmra.mxu2 %vm210_vm1, %v1576_v12 }
 0x11a   :  { %v867_v51 = vpack.c.bf16 %v840_v20, %v839_v18 }
 0x11b   :  { %v708_v21 = vpop.f32.mrf.mxu2 }
 0x11c   :  { %1508 = vmatmul.msk.bf16.gmra.mxu3 %vm915_vm3, %v867_v51  ;;  %v773_v25 = vadd.f32 %v708_v21, %v450_v24 }
 0x11d   :  { %v451_v23 = vpop.f32.mrf.mxu1 }
 0x11e   :  { %v452_v28 = vadd.f32 %v451_v23, %v1823_v61  ;;  %v809_v31 = vadd.f32 %v1886_v29, %v773_v25 }
 0x120   :  { %v841_v37 = vmax.f32 %v809_v31, 0.0 }
 0x123   :  { %v710_v30 = vpop.f32.mrf.mxu2 }
 0x124   :  { %v774_v32 = vadd.f32 %v710_v30, %v452_v28 }
 0x125   :  { %v454_v34 = vpop.f32.mrf.mxu1 }
 0x126   :  { %v810_v36 = vadd.f32 %v1886_v29, %v774_v32  ;;  %v455_v41 = vadd.f32 %v454_v34, %v1840_v4 }
 0x128   :  { %v842_v38 = vmax.f32 %v810_v36, 0.0  ;;  %1402 = vmatmul.msk.bf16.gmra.mxu1 %vm363_vm2, %v85_v33  ;;  %1486 = vmatmul.msk.bf16.gmra.mxu2 %vm210_vm1, %v1577_v58 }
 0x12a   :  { %v868_v61 = vpack.c.bf16 %v842_v38, %v841_v37 }
 0x12b   :  { %v713_v39 = vpop.f32.mrf.mxu2 }
 0x12c   :  { %1509 = vmatmul.msk.bf16.gmra.mxu3 %vm915_vm3, %v868_v61  ;;  %v775_v43 = vadd.f32 %v713_v39, %v455_v41 }
 0x12d   :  { %v456_v40 = vpop.f32.mrf.mxu1 }
 0x12e   :  { %v457_v47 = vadd.f32 %v456_v40, %v1846_v6  ;;  %v811_v4 = vadd.f32 %v1886_v29, %v775_v43  ;;  %v2005_v6 = vpop.f32.mrf.mxu3  ;;  %v2029_v40 = vld [vmem:[%s2285_s8] ss:$0 sm:$0xff] }
 0x130   :  { %v843_v60 = vmax.f32 %v811_v4, 0.0 }
 0x133   :  { %v715_v50 = vpop.f32.mrf.mxu2 }
 0x134   :  { %v776_v52 = vadd.f32 %v715_v50, %v457_v47 }
 0x135   :  { %v459_v56 = vpop.f32.mrf.mxu1 }
 0x136   :  { %v812_v57 = vadd.f32 %v1886_v29, %v776_v52  ;;  %v460_v7 = vadd.f32 %v459_v56, %v1862_v13  ;;  %v2010_v9 = vpop.f32.mrf.mxu3 }
 0x138   :  { %v844_v62 = vmax.f32 %v812_v57, 0.0  ;;  %1403 = vmatmul.msk.bf16.gmra.mxu1 %vm363_vm2, %v86_v53  ;;  %1487 = vmatmul.msk.bf16.gmra.mxu2 %vm210_vm1, %v1578_v54 }
 0x13a   :  { %v869_v63 = vpack.c.bf16 %v844_v62, %v843_v60 }
 0x13b   :  { %v718_v2 = vpop.f32.mrf.mxu2 }
 0x13c   :  { %1510 = vmatmul.msk.bf16.gmra.mxu3 %vm915_vm3, %v869_v63  ;;  %v777_v8 = vadd.f32 %v718_v2, %v460_v7 }
 0x13d   :  { %v461_v3 = vpop.f32.mrf.mxu1 }
 0x13e   :  { %v462_v48 = vadd.f32 %v461_v3, %v1868_v16  ;;  %v813_v12 = vadd.f32 %v1886_v29, %v777_v8  ;;  %v2015_v24 = vpop.f32.mrf.mxu3 }
 0x140   :  { %v845_v20 = vmax.f32 %v813_v12, 0.0 }
 0x143   :  { %v720_v11 = vpop.f32.mrf.mxu2 }
 0x144   :  { %v778_v15 = vadd.f32 %v720_v11, %v462_v48 }
 0x145   :  { %v464_v17 = vpop.f32.mrf.mxu1 }
 0x146   :  { %v814_v18 = vadd.f32 %v1886_v29, %v778_v15  ;;  %v465_v16 = vadd.f32 %v464_v17, %v1792_v49  ;;  %v2021_v33 = vpop.f32.mrf.mxu3 }
 0x148   :  { %v846_v51 = vmax.f32 %v814_v18, 0.0 }
 0x14a   :  { %v870_v21 = vpack.c.bf16 %v846_v51, %v845_v20 }
 0x14b   :  { %v723_v23 = vpop.f32.mrf.mxu2 }
 0x14c   :  { %1511 = vmatmul.msk.bf16.gmra.mxu3 %vm915_vm3, %v870_v21  ;;  %v779_v25 = vadd.f32 %v723_v23, %v465_v16 }
 0x14d   :  { %v466_v13 = vpop.f32.mrf.mxu1 }
 0x14e   :  { %v467_v26 = vadd.f32 %v466_v13, %v1808_v55  ;;  %v815_v28 = vadd.f32 %v1886_v29, %v779_v25 }
 0x150   :  { %v847_v58 = vmax.f32 %v815_v28, 0.0 }
 0x153   :  { %v725_v27 = vpop.f32.mrf.mxu2 }
 0x154   :  { %v780_v30 = vadd.f32 %v725_v27, %v467_v26 }
 0x155   :  { %v469_v31 = vpop.f32.mrf.mxu1 }
 0x156   :  { %v816_v32 = vadd.f32 %v1886_v29, %v780_v30  ;;  %v470_v49 = vadd.f32 %v469_v31, %v1818_v59 }
 0x158   :  { %v848_v34 = vmax.f32 %v816_v32, 0.0 }
 0x15a   :  { %v871_v36 = vpack.c.bf16 %v848_v34, %v847_v58 }
 0x15b   :  { %v728_v37 = vpop.f32.mrf.mxu2 }
 0x15c   :  { %1512 = vmatmul.msk.bf16.gmra.mxu3 %vm915_vm3, %v871_v36  ;;  %v781_v55 = vadd.f32 %v728_v37, %v470_v49 }
 0x15d   :  { %v471_v38 = vpop.f32.mrf.mxu1 }
 0x15e   :  { %v472_v39 = vadd.f32 %v471_v38, %v1834_v1  ;;  %v817_v43 = vadd.f32 %v1886_v29, %v781_v55 }
 0x15f   :  { %v973_v61 = vpop.f32.mrf.mxu3 }
 0x160   :  { %v974_v46 = vadd.f32 %v2029_v40, %v973_v61  ;;  %v849_v59 = vmax.f32 %v817_v43, 0.0 }
 0x162   :  { %v1053_v1 = vmax.f32 %v974_v46, 0.0 }
 0x163   :  { %v730_v41 = vpop.f32.mrf.mxu2 }
 0x164   :  { %v782_v44 = vadd.f32 %v730_v41, %v472_v39 }
 0x165   :  { %v474_v45 = vpop.f32.mrf.mxu1 }
 0x166   :  { %v818_v47 = vadd.f32 %v1886_v29, %v782_v44  ;;  %v475_v62 = vadd.f32 %v474_v45, %v1844_v5 }
 0x167   :  { %v975_v50 = vpop.f32.mrf.mxu3 }
 0x168   :  { %v850_v4 = vmax.f32 %v818_v47, 0.0  ;;  %v976_v52 = vadd.f32 %v2029_v40, %v975_v50 }
 0x16a   :  { %v872_v53 = vpack.c.bf16 %v850_v4, %v849_v59  ;;  %v1054_v54 = vmax.f32 %v976_v52, 0.0 }
 0x16b   :  { %v733_v56 = vpop.f32.mrf.mxu2 }
 0x16c   :  { %v1085_v57 = vpack.c.bf16 %v1054_v54, %v1053_v1  ;;  %1513 = vmatmul.msk.bf16.gmra.mxu3 %vm915_vm3, %v872_v53  ;;  %v783_v2 = vadd.f32 %v733_v56, %v475_v62 }
 0x16d   :  { %v476_v60 = vpop.f32.mrf.mxu1 }
 0x16e   :  { %1528 = vmatmul.msk.bf16.vlgmr.msrb.gmra.mxu0 %vm1121_vm4, %v1085_v57  ;;  %v477_v3 = vadd.f32 %v476_v60, %v1857_v10  ;;  %v819_v8 = vadd.f32 %v1886_v29, %v783_v2 }
 0x16f   :  { %v978_v63 = vpop.f32.mrf.mxu3 }
 0x170   :  { %v979_v12 = vadd.f32 %v2029_v40, %v978_v63  ;;  %v851_v18 = vmax.f32 %v819_v8, 0.0 }
 0x172   :  { %v1055_v51 = vmax.f32 %v979_v12, 0.0 }
 0x173   :  { %v735_v7 = vpop.f32.mrf.mxu2 }
 0x174   :  { %v784_v48 = vadd.f32 %v735_v7, %v477_v3 }
 0x175   :  { %v479_v11 = vpop.f32.mrf.mxu1 }
 0x176   :  { %v820_v15 = vadd.f32 %v1886_v29, %v784_v48  ;;  %v480_v25 = vadd.f32 %v479_v11, %v1866_v14 }
 0x177   :  { %v980_v17 = vpop.f32.mrf.mxu3 }
 0x178   :  { %v852_v20 = vmax.f32 %v820_v15, 0.0  ;;  %v981_v5 = vadd.f32 %v2029_v40, %v980_v17 }
 0x17a   :  { %v873_v21 = vpack.c.bf16 %v852_v20, %v851_v18  ;;  %v1056_v23 = vmax.f32 %v981_v5, 0.0 }
 0x17b   :  { %v738_v13 = vpop.f32.mrf.mxu2 }
 0x17c   :  { %1514 = vmatmul.msk.bf16.gmra.mxu3 %vm915_vm3, %v873_v21  ;;  %v1086_v10 = vpack.c.bf16 %v1056_v23, %v1055_v51  ;;  %v785_v27 = vadd.f32 %v738_v13, %v480_v25 }
 0x17d   :  { %v481_v16 = vpop.f32.mrf.mxu1 }
 0x17e   :  { %1529 = vmatmul.msk.bf16.gmra.mxu0 %vm1121_vm4, %v1086_v10  ;;  %v482_v28 = vadd.f32 %v481_v16, %v1876_v19  ;;  %v821_v31 = vadd.f32 %v1886_v29, %v785_v27 }
 0x17f   :  { %v983_v26 = vpop.f32.mrf.mxu3 }
 0x180   :  { %v984_v34 = vadd.f32 %v2029_v40, %v983_v26  ;;  %v853_v38 = vmax.f32 %v821_v31, 0.0 }
 0x182   :  { %v1057_v61 = vmax.f32 %v984_v34, 0.0 }
 0x183   :  { %v740_v30 = vpop.f32.mrf.mxu2 }
 0x184   :  { %v786_v32 = vadd.f32 %v740_v30, %v482_v28 }
 0x185   :  { %v484_v58 = vpop.f32.mrf.mxu1 }
 0x186   :  { %v822_v36 = vadd.f32 %v1886_v29, %v786_v32  ;;  %v485_v44 = vadd.f32 %v484_v58, %v1948_v0 }
 0x187   :  { %v985_v37 = vpop.f32.mrf.mxu3 }
 0x188   :  { %v854_v49 = vmax.f32 %v822_v36, 0.0  ;;  %v986_v14 = vadd.f32 %v2029_v40, %v985_v37 }
 0x18a   :  { %v874_v55 = vpack.c.bf16 %v854_v49, %v853_v38  ;;  %v1058_v39 = vmax.f32 %v986_v14, 0.0 }
 0x18b   :  { %v743_v41 = vpop.f32.mrf.mxu2 }
 0x18c   :  { %1515 = vmatmul.msk.bf16.gmra.mxu3 %vm915_vm3, %v874_v55  ;;  %v1087_v19 = vpack.c.bf16 %v1058_v39, %v1057_v61  ;;  %v787_v46 = vadd.f32 %v743_v41, %v485_v44 }
 0x18d   :  { %v486_v43 = vpop.f32.mrf.mxu1 }
 0x18e   :  { %1530 = vmatmul.msk.bf16.gmra.mxu0 %vm1121_vm4, %v1087_v19  ;;  %v487_v47 = vadd.f32 %v486_v43, %v1964_v22  ;;  %v823_v59 = vadd.f32 %v1886_v29, %v787_v46 }
 0x18f   :  { %v988_v45 = vpop.f32.mrf.mxu3 }
 0x190   :  { %v989_v1 = vadd.f32 %v2029_v40, %v988_v45  ;;  %v855_v56 = vmax.f32 %v823_v59, 0.0 }
 0x192   :  { %v1059_v60 = vmax.f32 %v989_v1, 0.0 }
 0x193   :  { %v745_v50 = vpop.f32.mrf.mxu2 }
 0x194   :  { %v788_v4 = vadd.f32 %v745_v50, %v487_v47 }
 0x195   :  { %v489_v52 = vpop.f32.mrf.mxu1 }
 0x196   :  { %v824_v53 = vadd.f32 %v1886_v29, %v788_v4  ;;  %v490_v7 = vadd.f32 %v489_v52, %v1979_v35 }
 0x197   :  { %v990_v54 = vpop.f32.mrf.mxu3 }
 0x198   :  { %v856_v57 = vmax.f32 %v824_v53, 0.0  ;;  %v991_v0 = vadd.f32 %v2029_v40, %v990_v54 }
 0x19a   :  { %v875_v62 = vpack.c.bf16 %v856_v57, %v855_v56  ;;  %v1060_v63 = vmax.f32 %v991_v0, 0.0 }
 0x19b   :  { %v748_v2 = vpop.f32.mrf.mxu2 }
 0x19c   :  { %1516 = vmatmul.msk.bf16.gmra.mxu3 %vm915_vm3, %v875_v62  ;;  %v1088_v22 = vpack.c.bf16 %v1060_v63, %v1059_v60  ;;  %v789_v48 = vadd.f32 %v748_v2, %v490_v7 }
 0x19d   :  { %v491_v3 = vpop.f32.mrf.mxu1 }
 0x19e   :  { %1531 = vmatmul.msk.bf16.gmra.mxu0 %vm1121_vm4, %v1088_v22  ;;  %v492_v11 = vadd.f32 %v491_v3, %v1986_v42  ;;  %v825_v15 = vadd.f32 %v1886_v29, %v789_v48 }
 0x19f   :  { %v993_v8 = vpop.f32.mrf.mxu3 }
 0x1a0   :  { %v994_v20 = vadd.f32 %v2029_v40, %v993_v8  ;;  %v857_v21 = vmax.f32 %v825_v15, 0.0  ;;  %v2093_v15 = vld [vmem:[%s2287_s10] ss:$0 sm:$0xff] }
 0x1a2   :  { %v1061_v13 = vmax.f32 %v994_v20, 0.0 }
 0x1a3   :  { %v750_v12 = vpop.f32.mrf.mxu2 }
 0x1a4   :  { %v790_v17 = vadd.f32 %v750_v12, %v492_v11 }
 0x1a5   :  { %v494_v18 = vpop.f32.mrf.mxu1 }
 0x1a6   :  { %v826_v5 = vadd.f32 %v1886_v29, %v790_v17  ;;  %v495_v27 = vadd.f32 %v494_v18, %v2005_v6 }
 0x1a7   :  { %v995_v51 = vpop.f32.mrf.mxu3 }
 0x1a8   :  { %v858_v23 = vmax.f32 %v826_v5, 0.0  ;;  %v996_v35 = vadd.f32 %v2029_v40, %v995_v51 }
 0x1aa   :  { %v876_v10 = vpack.c.bf16 %v858_v23, %v857_v21  ;;  %v1062_v16 = vmax.f32 %v996_v35, 0.0 }
 0x1ab   :  { %v753_v25 = vpop.f32.mrf.mxu2 }
 0x1ac   :  { %v1089_v26 = vpack.c.bf16 %v1062_v16, %v1061_v13  ;;  %1517 = vmatmul.msk.bf16.gmra.mxu3 %vm915_vm3, %v876_v10  ;;  %v791_v30 = vadd.f32 %v753_v25, %v495_v27 }
 0x1ad   :  { %v496_v42 = vpop.f32.mrf.mxu1 }
 0x1ae   :  { %1532 = vmatmul.msk.bf16.gmra.mxu0 %vm1121_vm4, %v1089_v26  ;;  %v497_v31 = vadd.f32 %v496_v42, %v2010_v9  ;;  %v827_v58 = vadd.f32 %v1886_v29, %v791_v30 }
 0x1af   :  { %v998_v28 = vpop.f32.mrf.mxu3 }
 0x1b0   :  { %v999_v37 = vadd.f32 %v2029_v40, %v998_v28  ;;  %v859_v14 = vmax.f32 %v827_v58, 0.0 }
 0x1b2   :  { %v1063_v55 = vmax.f32 %v999_v37, 0.0 }
 0x1b3   :  { %v755_v32 = vpop.f32.mrf.mxu2 }
 0x1b4   :  { %v792_v34 = vadd.f32 %v755_v32, %v497_v31 }
 0x1b5   :  { %v499_v36 = vpop.f32.mrf.mxu1 }
 0x1b6   :  { %v828_v38 = vadd.f32 %v1886_v29, %v792_v34  ;;  %v500_v9 = vadd.f32 %v499_v36, %v2015_v24 }
 0x1b7   :  { %v1000_v49 = vpop.f32.mrf.mxu3 }
 0x1b8   :  { %v860_v61 = vmax.f32 %v828_v38, 0.0  ;;  %v1001_v6 = vadd.f32 %v2029_v40, %v1000_v49 }
 0x1ba   :  { %v877_v39 = vpack.c.bf16 %v860_v61, %v859_v14  ;;  %v1064_v41 = vmax.f32 %v1001_v6, 0.0 }
 0x1bb   :  { %v758_v19 = vpop.f32.mrf.mxu2 }
 0x1bc   :  { %v1090_v43 = vpack.c.bf16 %v1064_v41, %v1063_v55  ;;  %1518 = vmatmul.msk.bf16.gmra.mxu3 %vm915_vm3, %v877_v39  ;;  %v793_v46 = vadd.f32 %v758_v19, %v500_v9 }
 0x1bd   :  { %v501_v44 = vpop.f32.mrf.mxu1 }
 0x1be   :  { %1533 = vmatmul.msk.bf16.gmra.mxu0 %vm1121_vm4, %v1090_v43  ;;  %v502_v47 = vadd.f32 %v501_v44, %v2021_v33  ;;  %v829_v59 = vadd.f32 %v1886_v29, %v793_v46 }
 0x1bf   :  { %v1003_v45 = vpop.f32.mrf.mxu3 }
 0x1c0   :  { %v1004_v52 = vadd.f32 %v2029_v40, %v1003_v45  ;;  %v861_v54 = vmax.f32 %v829_v59, 0.0 }
 0x1c2   :  { %v1065_v57 = vmax.f32 %v1004_v52, 0.0 }
 0x1c3   :  { %v760_v50 = vpop.f32.mrf.mxu2 }
 0x1c4   :  { %v794_v4 = vadd.f32 %v760_v50, %v502_v47 }
 0x1c6   :  { %v830_v1 = vadd.f32 %v1886_v29, %v794_v4 }
 0x1c7   :  { %v1005_v53 = vpop.f32.mrf.mxu3 }
 0x1c8   :  { %v862_v56 = vmax.f32 %v830_v1, 0.0  ;;  %v1006_v24 = vadd.f32 %v2029_v40, %v1005_v53 }
 0x1ca   :  { %v878_v0 = vpack.c.bf16 %v862_v56, %v861_v54  ;;  %v1066_v60 = vmax.f32 %v1006_v24, 0.0 }
 0x1cc   :  { %v1091_v62 = vpack.c.bf16 %v1066_v60, %v1065_v57  ;;  %1519 = vmatmul.msk.bf16.gmra.mxu3 %vm915_vm3, %v878_v0 }
 0x1ce   :  { %1534 = vmatmul.msk.bf16.gmra.mxu0 %vm1121_vm4, %v1091_v62 }
 0x1cf   :  { %v1008_v33 = vpop.f32.mrf.mxu3 }
 0x1d0   :  { %v1009_v63 = vadd.f32 %v2029_v40, %v1008_v33 }
 0x1d2   :  { %v1067_v29 = vmax.f32 %v1009_v63, 0.0 }
 0x1d7   :  { %v1010_v2 = vpop.f32.mrf.mxu3 }
 0x1d8   :  { %v1011_v22 = vadd.f32 %v2029_v40, %v1010_v2 }
 0x1da   :  { %v1068_v3 = vmax.f32 %v1011_v22, 0.0 }
 0x1dc   :  { %v1092_v7 = vpack.c.bf16 %v1068_v3, %v1067_v29 }
 0x1de   :  { %1535 = vmatmul.msk.bf16.gmra.mxu0 %vm1121_vm4, %v1092_v7 }
 0x1df   :  { %v1013_v8 = vpop.f32.mrf.mxu3 }
 0x1e0   :  { %v1014_v48 = vadd.f32 %v2029_v40, %v1013_v8 }
 0x1e2   :  { %v1069_v17 = vmax.f32 %v1014_v48, 0.0 }
 0x1e7   :  { %v1015_v11 = vpop.f32.mrf.mxu3 }
 0x1e8   :  { %v1016_v12 = vadd.f32 %v2029_v40, %v1015_v11 }
 0x1ea   :  { %v1070_v18 = vmax.f32 %v1016_v12, 0.0 }
 0x1eb   :  { %v1179_v20 = vpop.f32.mrf.mxu0 }
 0x1ec   :  { %v1093_v5 = vpack.c.bf16 %v1070_v18, %v1069_v17  ;;  %v1180_v51 = vadd.f32 %v2093_v15, %v1179_v20 }
 0x1ee   :  { %1260 = vst.msk [vmem:[%s2288_s11] sm:$0xff] %vm1259_vm5, %v1180_v51  ;;  %1536 = vmatmul.msk.bf16.gmra.mxu0 %vm1121_vm4, %v1093_v5 }
 0x1ef   :  { %v1018_v21 = vpop.f32.mrf.mxu3 }
 0x1f0   :  { %v1019_v13 = vadd.f32 %v2029_v40, %v1018_v21 }
 0x1f2   :  { %v1071_v25 = vmax.f32 %v1019_v13, 0.0 }
 0x1f3   :  { %v1181_v23 = vpop.f32.mrf.mxu0 }
 0x1f4   :  { %v1182_v35 = vadd.f32 %v2093_v15, %v1181_v23 }
 0x1f6   :  { %1261 = vst.msk [vmem:[%s2288_s11 + $0x8] sm:$0xff] %vm1259_vm5, %v1182_v35 }
 0x1f7   :  { %v1020_v10 = vpop.f32.mrf.mxu3 }
 0x1f8   :  { %v1021_v16 = vadd.f32 %v2029_v40, %v1020_v10 }
 0x1fa   :  { %v1072_v26 = vmax.f32 %v1021_v16, 0.0 }
 0x1fb   :  { %v1184_v42 = vpop.f32.mrf.mxu0 }
 0x1fc   :  { %v1094_v27 = vpack.c.bf16 %v1072_v26, %v1071_v25  ;;  %v1185_v28 = vadd.f32 %v2093_v15, %v1184_v42 }
 0x1fe   :  { %1262 = vst.msk [vmem:[%s2288_s11 + $0x10] sm:$0xff] %vm1259_vm5, %v1185_v28  ;;  %1537 = vmatmul.msk.bf16.gmra.mxu0 %vm1121_vm4, %v1094_v27 }
 0x1ff   :  { %v1023_v30 = vpop.f32.mrf.mxu3 }
 0x200   :  { %v1024_v58 = vadd.f32 %v2029_v40, %v1023_v30 }
 0x202   :  { %v1073_v37 = vmax.f32 %v1024_v58, 0.0 }
 0x203   :  { %v1186_v31 = vpop.f32.mrf.mxu0 }
 0x204   :  { %v1187_v32 = vadd.f32 %v2093_v15, %v1186_v31 }
 0x206   :  { %1263 = vst.msk [vmem:[%s2288_s11 + $0x18] sm:$0xff] %vm1259_vm5, %v1187_v32 }
 0x207   :  { %v1025_v34 = vpop.f32.mrf.mxu3 }
 0x208   :  { %v1026_v36 = vadd.f32 %v2029_v40, %v1025_v34 }
 0x20a   :  { %v1074_v38 = vmax.f32 %v1026_v36, 0.0 }
 0x20b   :  { %v1189_v49 = vpop.f32.mrf.mxu0 }
 0x20c   :  { %v1095_v14 = vpack.c.bf16 %v1074_v38, %v1073_v37  ;;  %v1190_v61 = vadd.f32 %v2093_v15, %v1189_v49 }
 0x20e   :  { %1264 = vst.msk [vmem:[%s2288_s11 + $0x20] sm:$0xff] %vm1259_vm5, %v1190_v61  ;;  %1538 = vmatmul.msk.bf16.gmra.mxu0 %vm1121_vm4, %v1095_v14 }
 0x20f   :  { %v1028_v6 = vpop.f32.mrf.mxu3 }
 0x210   :  { %v1029_v41 = vadd.f32 %v2029_v40, %v1028_v6 }
 0x212   :  { %v1075_v9 = vmax.f32 %v1029_v41, 0.0 }
 0x213   :  { %v1191_v55 = vpop.f32.mrf.mxu0 }
 0x214   :  { %v1192_v39 = vadd.f32 %v2093_v15, %v1191_v55 }
 0x216   :  { %1265 = vst.msk [vmem:[%s2288_s11 + $0x28] sm:$0xff] %vm1259_vm5, %v1192_v39 }
 0x217   :  { %v1030_v19 = vpop.f32.mrf.mxu3 }
 0x218   :  { %v1031_v43 = vadd.f32 %v2029_v40, %v1030_v19 }
 0x21a   :  { %v1076_v44 = vmax.f32 %v1031_v43, 0.0 }
 0x21b   :  { %v1194_v45 = vpop.f32.mrf.mxu0 }
 0x21c   :  { %v1096_v46 = vpack.c.bf16 %v1076_v44, %v1075_v9  ;;  %v1195_v47 = vadd.f32 %v2093_v15, %v1194_v45 }
 0x21e   :  { %1266 = vst.msk [vmem:[%s2288_s11 + $0x30] sm:$0xff] %vm1259_vm5, %v1195_v47  ;;  %1539 = vmatmul.msk.bf16.gmra.mxu0 %vm1121_vm4, %v1096_v46 }
 0x21f   :  { %v1033_v50 = vpop.f32.mrf.mxu3 }
 0x220   :  { %v1034_v52 = vadd.f32 %v2029_v40, %v1033_v50 }
 0x222   :  { %v1077_v54 = vmax.f32 %v1034_v52, 0.0 }
 0x223   :  { %v1196_v59 = vpop.f32.mrf.mxu0 }
 0x224   :  { %v1197_v4 = vadd.f32 %v2093_v15, %v1196_v59 }
 0x226   :  { %1267 = vst.msk [vmem:[%s2288_s11 + $0x38] sm:$0xff] %vm1259_vm5, %v1197_v4 }
 0x227   :  { %v1035_v1 = vpop.f32.mrf.mxu3 }
 0x228   :  { %v1036_v53 = vadd.f32 %v2029_v40, %v1035_v1 }
 0x22a   :  { %v1078_v56 = vmax.f32 %v1036_v53, 0.0 }
 0x22b   :  { %v1199_v24 = vpop.f32.mrf.mxu0 }
 0x22c   :  { %v1097_v57 = vpack.c.bf16 %v1078_v56, %v1077_v54  ;;  %v1200_v0 = vadd.f32 %v2093_v15, %v1199_v24 }
 0x22e   :  { %1268 = vst.msk [vmem:[%s2288_s11 + $0x40] sm:$0xff] %vm1259_vm5, %v1200_v0  ;;  %1540 = vmatmul.msk.bf16.gmra.mxu0 %vm1121_vm4, %v1097_v57 }
 0x22f   :  { %v1038_v60 = vpop.f32.mrf.mxu3 }
 0x230   :  { %v1039_v63 = vadd.f32 %v2029_v40, %v1038_v60 }
 0x232   :  { %v1079_v29 = vmax.f32 %v1039_v63, 0.0 }
 0x233   :  { %v1201_v62 = vpop.f32.mrf.mxu0 }
 0x234   :  { %v1202_v33 = vadd.f32 %v2093_v15, %v1201_v62 }
 0x236   :  { %1269 = vst.msk [vmem:[%s2288_s11 + $0x48] sm:$0xff] %vm1259_vm5, %v1202_v33 }
 0x237   :  { %v1040_v2 = vpop.f32.mrf.mxu3 }
 0x238   :  { %v1041_v22 = vadd.f32 %v2029_v40, %v1040_v2 }
 0x23a   :  { %v1080_v3 = vmax.f32 %v1041_v22, 0.0 }
 0x23b   :  { %v1204_v7 = vpop.f32.mrf.mxu0 }
 0x23c   :  { %v1098_v8 = vpack.c.bf16 %v1080_v3, %v1079_v29  ;;  %v1205_v48 = vadd.f32 %v2093_v15, %v1204_v7 }
 0x23e   :  { %1270 = vst.msk [vmem:[%s2288_s11 + $0x50] sm:$0xff] %vm1259_vm5, %v1205_v48  ;;  %1541 = vmatmul.msk.bf16.gmra.mxu0 %vm1121_vm4, %v1098_v8 }
 0x23f   :  { %v1043_v11 = vpop.f32.mrf.mxu3 }
 0x240   :  { %v1044_v18 = vadd.f32 %v2029_v40, %v1043_v11 }
 0x242   :  { %v1081_v51 = vmax.f32 %v1044_v18, 0.0 }
 0x243   :  { %v1206_v12 = vpop.f32.mrf.mxu0 }
 0x244   :  { %v1207_v17 = vadd.f32 %v2093_v15, %v1206_v12 }
 0x246   :  { %1271 = vst.msk [vmem:[%s2288_s11 + $0x58] sm:$0xff] %vm1259_vm5, %v1207_v17 }
 0x247   :  { %v1045_v20 = vpop.f32.mrf.mxu3 }
 0x248   :  { %v1046_v5 = vadd.f32 %v2029_v40, %v1045_v20 }
 0x24a   :  { %v1082_v21 = vmax.f32 %v1046_v5, 0.0 }
 0x24b   :  { %v1209_v23 = vpop.f32.mrf.mxu0 }
 0x24c   :  { %v1099_v35 = vpack.c.bf16 %v1082_v21, %v1081_v51  ;;  %v1210_v13 = vadd.f32 %v2093_v15, %v1209_v23 }
 0x24e   :  { %1272 = vst.msk [vmem:[%s2288_s11 + $0x60] sm:$0xff] %vm1259_vm5, %v1210_v13  ;;  %1542 = vmatmul.msk.bf16.gmra.mxu0 %vm1121_vm4, %v1099_v35 }
 0x24f   :  { %v1048_v10 = vpop.f32.mrf.mxu3 }
 0x250   :  { %v1049_v26 = vadd.f32 %v2029_v40, %v1048_v10 }
 0x252   :  { %v1083_v28 = vmax.f32 %v1049_v26, 0.0 }
 0x253   :  { %v1211_v16 = vpop.f32.mrf.mxu0 }
 0x254   :  { %v1212_v25 = vadd.f32 %v2093_v15, %v1211_v16 }
 0x256   :  { %1273 = vst.msk [vmem:[%s2288_s11 + $0x68] sm:$0xff] %vm1259_vm5, %v1212_v25 }
 0x257   :  { %v1050_v42 = vpop.f32.mrf.mxu3 }
 0x258   :  { %v1051_v27 = vadd.f32 %v2029_v40, %v1050_v42 }
 0x25a   :  { %v1084_v30 = vmax.f32 %v1051_v27, 0.0 }
 0x25b   :  { %v1214_v31 = vpop.f32.mrf.mxu0 }
 0x25c   :  { %v1100_v32 = vpack.c.bf16 %v1084_v30, %v1083_v28  ;;  %v1215_v58 = vadd.f32 %v2093_v15, %v1214_v31 }
 0x25e   :  { %1274 = vst.msk [vmem:[%s2288_s11 + $0x70] sm:$0xff] %vm1259_vm5, %v1215_v58  ;;  %1543 = vmatmul.msk.bf16.gmra.mxu0 %vm1121_vm4, %v1100_v32 }
 0x263   :  { %v1216_v34 = vpop.f32.mrf.mxu0 }
 0x264   :  { %v1217_v36 = vadd.f32 %v2093_v15, %v1216_v34 }
 0x266   :  { %1275 = vst.msk [vmem:[%s2288_s11 + $0x78] sm:$0xff] %vm1259_vm5, %v1217_v36 }
 0x26b   :  { %v1219_v40 = vpop.f32.mrf.mxu0 }
 0x26c   :  { %v1220_v37 = vadd.f32 %v2093_v15, %v1219_v40 }
 0x26e   :  { %1276 = vst.msk [vmem:[%s2288_s11 + $0x80] sm:$0xff] %vm1259_vm5, %v1220_v37 }
 0x273   :  { %v1221_v38 = vpop.f32.mrf.mxu0 }
 0x274   :  { %v1222_v49 = vadd.f32 %v2093_v15, %v1221_v38 }
 0x276   :  { %1277 = vst.msk [vmem:[%s2288_s11 + $0x88] sm:$0xff] %vm1259_vm5, %v1222_v49 }
 0x27b   :  { %v1224_v14 = vpop.f32.mrf.mxu0 }
 0x27c   :  { %v1225_v61 = vadd.f32 %v2093_v15, %v1224_v14 }
 0x27e   :  { %1278 = vst.msk [vmem:[%s2288_s11 + $0x90] sm:$0xff] %vm1259_vm5, %v1225_v61 }
 0x283   :  { %v1226_v6 = vpop.f32.mrf.mxu0 }
 0x284   :  { %v1227_v55 = vadd.f32 %v2093_v15, %v1226_v6 }
 0x286   :  { %1279 = vst.msk [vmem:[%s2288_s11 + $0x98] sm:$0xff] %vm1259_vm5, %v1227_v55 }
 0x28b   :  { %v1229_v39 = vpop.f32.mrf.mxu0 }
 0x28c   :  { %v1230_v41 = vadd.f32 %v2093_v15, %v1229_v39 }
 0x28e   :  { %1280 = vst.msk [vmem:[%s2288_s11 + $0xa0] sm:$0xff] %vm1259_vm5, %v1230_v41 }
 0x293   :  { %v1231_v19 = vpop.f32.mrf.mxu0 }
 0x294   :  { %v1232_v43 = vadd.f32 %v2093_v15, %v1231_v19 }
 0x296   :  { %1281 = vst.msk [vmem:[%s2288_s11 + $0xa8] sm:$0xff] %vm1259_vm5, %v1232_v43 }
 0x29b   :  { %v1234_v9 = vpop.f32.mrf.mxu0 }
 0x29c   :  { %v1235_v44 = vadd.f32 %v2093_v15, %v1234_v9 }
 0x29e   :  { %1282 = vst.msk [vmem:[%s2288_s11 + $0xb0] sm:$0xff] %vm1259_vm5, %v1235_v44 }
 0x2a3   :  { %v1236_v45 = vpop.f32.mrf.mxu0 }
 0x2a4   :  { %v1237_v46 = vadd.f32 %v2093_v15, %v1236_v45 }
 0x2a6   :  { %1283 = vst.msk [vmem:[%s2288_s11 + $0xb8] sm:$0xff] %vm1259_vm5, %v1237_v46 }
 0x2ab   :  { %v1239_v47 = vpop.f32.mrf.mxu0 }
 0x2ac   :  { %v1240_v50 = vadd.f32 %v2093_v15, %v1239_v47 }
 0x2ae   :  { %1284 = vst.msk [vmem:[%s2288_s11 + $0xc0] sm:$0xff] %vm1259_vm5, %v1240_v50 }
 0x2b3   :  { %v1241_v59 = vpop.f32.mrf.mxu0 }
 0x2b4   :  { %v1242_v4 = vadd.f32 %v2093_v15, %v1241_v59 }
 0x2b6   :  { %1285 = vst.msk [vmem:[%s2288_s11 + $0xc8] sm:$0xff] %vm1259_vm5, %v1242_v4 }
 0x2bb   :  { %v1244_v52 = vpop.f32.mrf.mxu0 }
 0x2bc   :  { %v1245_v1 = vadd.f32 %v2093_v15, %v1244_v52 }
 0x2be   :  { %1286 = vst.msk [vmem:[%s2288_s11 + $0xd0] sm:$0xff] %vm1259_vm5, %v1245_v1 }
 0x2c3   :  { %v1246_v53 = vpop.f32.mrf.mxu0 }
 0x2c4   :  { %v1247_v54 = vadd.f32 %v2093_v15, %v1246_v53 }
 0x2c6   :  { %1287 = vst.msk [vmem:[%s2288_s11 + $0xd8] sm:$0xff] %vm1259_vm5, %v1247_v54 }
 0x2cb   :  { %v1249_v56 = vpop.f32.mrf.mxu0 }
 0x2cc   :  { %v1250_v24 = vadd.f32 %v2093_v15, %v1249_v56 }
 0x2ce   :  { %1288 = vst.msk [vmem:[%s2288_s11 + $0xe0] sm:$0xff] %vm1259_vm5, %v1250_v24 }
 0x2d3   :  { %v1251_v57 = vpop.f32.mrf.mxu0 }
 0x2d4   :  { %v1252_v0 = vadd.f32 %v2093_v15, %v1251_v57 }
 0x2d6   :  { %1289 = vst.msk [vmem:[%s2288_s11 + $0xe8] sm:$0xff] %vm1259_vm5, %v1252_v0 }
 0x2db   :  { %v1254_v60 = vpop.f32.mrf.mxu0 }
 0x2dc   :  { %v1255_v62 = vadd.f32 %v2093_v15, %v1254_v60 }
 0x2de   :  { %1290 = vst.msk [vmem:[%s2288_s11 + $0xf0] sm:$0xff] %vm1259_vm5, %v1255_v62 }
 0x2e3   :  { %v1256_v33 = vpop.f32.mrf.mxu0 }
 0x2e4   :  { %v1257_v63 = vadd.f32 %v2093_v15, %v1256_v33 }
 0x2e6   :  { %1291 = vst.msk [vmem:[%s2288_s11 + $0xf8] sm:$0xff] %vm1259_vm5, %v1257_v63 }

</bundles_post_ra>
